<compile_context>
chip_gen: v7x
topology: tpu7x:2x2x1
jax: 0.10.0
libtpu: 0.0.40
codegen_flags: <defaults>
</compile_context>

<pallas_src>
import functools

import jax
import jax.numpy as jnp
from jax import lax
from jax.experimental import pallas as pl
from jax.experimental.pallas import tpu as pltpu


def _msd_kernel(bits_ref, x_ref, w_ref, b_ref, out_ref, *, K, keep_thresh, scale):
    x = x_ref[...]                                   # (TB, H) f32
    # Accumulate the K keep-masks (integer-domain compare; K is small and
    # static, so the Python loop unrolls).
    keep_sum = jnp.zeros(x.shape, jnp.float32)
    for k in range(K):
        keep_sum = keep_sum + (bits_ref[k] >= keep_thresh).astype(jnp.float32)
    # mean over K of inverted dropout, applied as a single deferred scale.
    xm = x * (keep_sum * jnp.float32(scale))         # (TB, H)
    # Single MXU matmul, contracting H of both operands (weight stays (L, H)).
    out = lax.dot_general(
        xm, w_ref[...], (((1,), (1,)), ((), ())),
        preferred_element_type=jnp.float32)          # (TB, L)
    out_ref[...] = out + b_ref[...]                  # bias added once


def multi_sample_dropout(x, weight, bias, key, *, K=5, p=0.5, block_b=512):
    """x: (B, H) f32; weight: (L, H) f32 (nn.Linear layout); bias: (L,) f32."""
    B, H = x.shape
    L = weight.shape[0]
    b2d = bias.reshape(1, L).astype(jnp.float32)

    keep_prob = 1.0 - float(p)
    keep_thresh = int(round(float(p) * (1 << 24)))       # P(bits >= thresh) = 1-p
    scale = (1.0 / (keep_prob * K)) if keep_prob > 0.0 else 0.0

    # K independent 24-bit uniforms per element, drawn with the portable JAX
    # PRNG (works on real TPUs and in the Pallas interpreter alike).
    bits = jax.random.randint(key, (K, B, H), 0, 1 << 24, dtype=jnp.int32)

    # Batch tile: full batch for small B, otherwise a pipelined row grid.
    tb = B if B <= block_b else block_b
    grid = (pl.cdiv(B, tb),)

    kernel = functools.partial(
        _msd_kernel, K=K, keep_thresh=keep_thresh, scale=scale)

    # TODO(synk): for tiny num_labels on v5e, pad L to 128 lanes in out_specs
    # (slice in the wrapper) to avoid masked partial stores.
    return pl.pallas_call(
        kernel,
        out_shape=jax.ShapeDtypeStruct((B, L), jnp.float32),
        grid=grid,
        in_specs=[
            pl.BlockSpec((K, tb, H), lambda i: (0, i, 0)),   # dropout bits
            pl.BlockSpec((tb, H), lambda i: (i, 0)),         # x rows
            pl.BlockSpec((L, H), lambda i: (0, 0)),          # weight (L, H)
            pl.BlockSpec((1, L), lambda i: (0, 0)),          # bias
        ],
        out_specs=pl.BlockSpec((tb, L), lambda i: (i, 0)),
        compiler_params=pltpu.CompilerParams(
            dimension_semantics=("parallel",)),
    )(bits, x.astype(jnp.float32), weight.astype(jnp.float32), b2d)


if __name__ == "__main__":
    key = jax.random.PRNGKey(0)
    k_x, k_w, k_b, k_drop = jax.random.split(key, 4)

    batch, hidden, num_labels = 8, 32, 8
    K, p = 5, 0.5

    x = jax.random.normal(k_x, (batch, hidden), dtype=jnp.float32)
    # nn.Linear parameter layout: weight (out_features, in_features), bias (out,)
    weight = jax.random.normal(k_w, (num_labels, hidden), dtype=jnp.float32) * 0.02
    bias = jax.random.normal(k_b, (num_labels,), dtype=jnp.float32) * 0.01

    out = multi_sample_dropout(x, weight, bias, k_drop, K=K, p=p)
    out = jax.block_until_ready(out)

    # Pure-JAX reference with identical randomness (exact same math, hoisted).
    bits_ref = jax.random.randint(k_drop, (K, batch, hidden), 0, 1 << 24,
                                  dtype=jnp.int32)
    keep_sum = jnp.sum((bits_ref >= int(round(p * (1 << 24)))).astype(jnp.float32),
                       axis=0)
    xm_ref = x * keep_sum * (1.0 / ((1.0 - p) * K))
    ref = xm_ref @ weight.T + bias

    assert out.shape == (batch, num_labels)
    assert out.dtype == jnp.float32
    assert bool(jnp.all(jnp.isfinite(out)))
    assert bool(jnp.allclose(out, ref, rtol=1e-5, atol=1e-5))
    print("KERNEL_OK")
</pallas_src>

<mosaic_0001>
module attributes {stable_mosaic.version = 11 : i64} {
  func.func @_msd_kernel(%arg0: i32, %arg1: memref<5x8x32xi32, #tpu.memory_space<vmem>>, %arg2: memref<8x32xf32, #tpu.memory_space<vmem>>, %arg3: memref<8x32xf32, #tpu.memory_space<vmem>>, %arg4: memref<1x8xf32, #tpu.memory_space<vmem>>, %arg5: memref<8x8xf32, #tpu.memory_space<vmem>>) attributes {dimension_semantics = [#tpu.dimension_semantics<parallel>], iteration_bounds = array<i64: 1>, scalar_prefetch = 0 : i64, scratch_operands = 0 : i64, tpu.core_type = #tpu.core_type<tc>, window_params = [{transform_indices = @transform_0, window_bounds = array<i64: 5, 8, 32>}, {transform_indices = @transform_1, window_bounds = array<i64: 8, 32>}, {pipeline_mode = #tpu.pipeline_mode<synchronous>, transform_indices = @transform_2, window_bounds = array<i64: 8, 32>}, {pipeline_mode = #tpu.pipeline_mode<synchronous>, transform_indices = @transform_3, window_bounds = array<i64: 1, 8>}, {transform_indices = @transform_4, window_bounds = array<i64: 8, 8>}]} {
    %c0 = arith.constant 0 : index
    %c0_0 = arith.constant 0 : index
    %0 = vector.load %arg2[%c0, %c0_0] : memref<8x32xf32, #tpu.memory_space<vmem>>, vector<8x32xf32>
    %cst = arith.constant 0.000000e+00 : f32
    %1 = vector.broadcast %cst : f32 to vector<8x32xf32>
    %c0_1 = arith.constant 0 : index
    %c0_2 = arith.constant 0 : index
    %c0_3 = arith.constant 0 : index
    %2 = vector.load %arg1[%c0_1, %c0_2, %c0_3] : memref<5x8x32xi32, #tpu.memory_space<vmem>>, vector<1x8x32xi32>
    %3 = vector.shape_cast %2 : vector<1x8x32xi32> to vector<8x32xi32>
    %c8388608_i32 = arith.constant 8388608 : i32
    %4 = vector.broadcast %c8388608_i32 : i32 to vector<8x32xi32>
    %5 = arith.cmpi sge, %3, %4 : vector<8x32xi32>
    %6 = arith.extui %5 : vector<8x32xi1> to vector<8x32xi32>
    %7 = arith.sitofp %6 : vector<8x32xi32> to vector<8x32xf32>
    %8 = arith.addf %1, %7 : vector<8x32xf32>
    %c1 = arith.constant 1 : index
    %c0_4 = arith.constant 0 : index
    %c0_5 = arith.constant 0 : index
    %9 = vector.load %arg1[%c1, %c0_4, %c0_5] : memref<5x8x32xi32, #tpu.memory_space<vmem>>, vector<1x8x32xi32>
    %10 = vector.shape_cast %9 : vector<1x8x32xi32> to vector<8x32xi32>
    %c8388608_i32_6 = arith.constant 8388608 : i32
    %11 = vector.broadcast %c8388608_i32_6 : i32 to vector<8x32xi32>
    %12 = arith.cmpi sge, %10, %11 : vector<8x32xi32>
    %13 = arith.extui %12 : vector<8x32xi1> to vector<8x32xi32>
    %14 = arith.sitofp %13 : vector<8x32xi32> to vector<8x32xf32>
    %15 = arith.addf %8, %14 : vector<8x32xf32>
    %c2 = arith.constant 2 : index
    %c0_7 = arith.constant 0 : index
    %c0_8 = arith.constant 0 : index
    %16 = vector.load %arg1[%c2, %c0_7, %c0_8] : memref<5x8x32xi32, #tpu.memory_space<vmem>>, vector<1x8x32xi32>
    %17 = vector.shape_cast %16 : vector<1x8x32xi32> to vector<8x32xi32>
    %c8388608_i32_9 = arith.constant 8388608 : i32
    %18 = vector.broadcast %c8388608_i32_9 : i32 to vector<8x32xi32>
    %19 = arith.cmpi sge, %17, %18 : vector<8x32xi32>
    %20 = arith.extui %19 : vector<8x32xi1> to vector<8x32xi32>
    %21 = arith.sitofp %20 : vector<8x32xi32> to vector<8x32xf32>
    %22 = arith.addf %15, %21 : vector<8x32xf32>
    %c3 = arith.constant 3 : index
    %c0_10 = arith.constant 0 : index
    %c0_11 = arith.constant 0 : index
    %23 = vector.load %arg1[%c3, %c0_10, %c0_11] : memref<5x8x32xi32, #tpu.memory_space<vmem>>, vector<1x8x32xi32>
    %24 = vector.shape_cast %23 : vector<1x8x32xi32> to vector<8x32xi32>
    %c8388608_i32_12 = arith.constant 8388608 : i32
    %25 = vector.broadcast %c8388608_i32_12 : i32 to vector<8x32xi32>
    %26 = arith.cmpi sge, %24, %25 : vector<8x32xi32>
    %27 = arith.extui %26 : vector<8x32xi1> to vector<8x32xi32>
    %28 = arith.sitofp %27 : vector<8x32xi32> to vector<8x32xf32>
    %29 = arith.addf %22, %28 : vector<8x32xf32>
    %c4 = arith.constant 4 : index
    %c0_13 = arith.constant 0 : index
    %c0_14 = arith.constant 0 : index
    %30 = vector.load %arg1[%c4, %c0_13, %c0_14] : memref<5x8x32xi32, #tpu.memory_space<vmem>>, vector<1x8x32xi32>
    %31 = vector.shape_cast %30 : vector<1x8x32xi32> to vector<8x32xi32>
    %c8388608_i32_15 = arith.constant 8388608 : i32
    %32 = vector.broadcast %c8388608_i32_15 : i32 to vector<8x32xi32>
    %33 = arith.cmpi sge, %31, %32 : vector<8x32xi32>
    %34 = arith.extui %33 : vector<8x32xi1> to vector<8x32xi32>
    %35 = arith.sitofp %34 : vector<8x32xi32> to vector<8x32xf32>
    %36 = arith.addf %29, %35 : vector<8x32xf32>
    %cst_16 = arith.constant 4.000000e-01 : f32
    %37 = vector.broadcast %cst_16 : f32 to vector<8x32xf32>
    %38 = arith.mulf %36, %37 : vector<8x32xf32>
    %39 = arith.mulf %0, %38 : vector<8x32xf32>
    %c0_17 = arith.constant 0 : index
    %c0_18 = arith.constant 0 : index
    %40 = vector.load %arg3[%c0_17, %c0_18] : memref<8x32xf32, #tpu.memory_space<vmem>>, vector<8x32xf32>
    %cst_19 = arith.constant dense<0.000000e+00> : vector<8x8xf32>
    %41 = tpu.matmul %39, %40, %cst_19 {dimension_numbers = #tpu.dot_dimension_numbers<[1], [1], [0], [0], [0, 0, 1, 0], [], []>} : vector<8x32xf32>, vector<8x32xf32>, vector<8x8xf32> -> vector<8x8xf32>
    %c0_20 = arith.constant 0 : index
    %c0_21 = arith.constant 0 : index
    %42 = vector.load %arg4[%c0_20, %c0_21] : memref<1x8xf32, #tpu.memory_space<vmem>>, vector<1x8xf32>
    %43 = vector.broadcast %42 : vector<1x8xf32> to vector<8x8xf32>
    %44 = arith.addf %41, %43 : vector<8x8xf32>
    %c0_22 = arith.constant 0 : index
    %c0_23 = arith.constant 0 : index
    %45 = vector.load %arg5[%c0_22, %c0_23] : memref<8x8xf32, #tpu.memory_space<vmem>>, vector<8x8xf32>
    tpu.vector_store %arg5[%c0_22, %c0_23], %44 {strides = array<i32>} : memref<8x8xf32, #tpu.memory_space<vmem>>, vector<8x8xf32>,
    return
  }
  func.func @transform_0(%arg0: i32) -> (i32, i32, i32) {
    %c0_i32 = arith.constant 0 : i32
    %c0_i32_0 = arith.constant 0 : i32
    %c0_i32_1 = arith.constant 0 : i32
    return %c0_i32, %arg0, %c0_i32_0 : i32, i32, i32
  }
  func.func @transform_1(%arg0: i32) -> (i32, i32) {
    %c0_i32 = arith.constant 0 : i32
    %c0_i32_0 = arith.constant 0 : i32
    return %arg0, %c0_i32 : i32, i32
  }
  func.func @transform_2(%arg0: i32) -> (i32, i32) {
    %c0_i32 = arith.constant 0 : i32
    %c0_i32_0 = arith.constant 0 : i32
    %c0_i32_1 = arith.constant 0 : i32
    return %c0_i32, %c0_i32_0 : i32, i32
  }
  func.func @transform_3(%arg0: i32) -> (i32, i32) {
    %c0_i32 = arith.constant 0 : i32
    %c0_i32_0 = arith.constant 0 : i32
    %c0_i32_1 = arith.constant 0 : i32
    return %c0_i32, %c0_i32_0 : i32, i32
  }
  func.func @transform_4(%arg0: i32) -> (i32, i32) {
    %c0_i32 = arith.constant 0 : i32
    %c0_i32_0 = arith.constant 0 : i32
    return %arg0, %c0_i32 : i32, i32
  }
}

</mosaic_0001>

<bundles_post_ra>
// kernel: tpu_custom_call.1
= control target key start
LH: loop header
LB: loop body
LE: loop exit
PB: predicated region body
PF: predicated region fallthrough
CT: control target
= control target key end

     0   :  { %9 = vsyncpa [#allocation3], 0  ;;  %s400_s0 = inlined_call_operand.hbm [shape: s32[5,8,32], index: 0, kind: input, shape index: {}]   ;;  %s401_s1 = inlined_call_operand.hbm [shape: f32[8,32], index: 1, kind: input, shape index: {}]   ;;  %s402_s2 = inlined_call_operand.hbm [shape: f32[8,32], index: 2, kind: input, shape index: {}]   ;;  %s403_s3 = inlined_call_operand.vmem [shape: f32[1,8], index: 3, kind: input, shape index: {}]   ;;  %s404_s4 = inlined_call_operand.hbm [shape: f32[8,8], index: 4, kind: output, shape index: {}]  }
   0x1   :  { %10 = vsyncpa [#allocation6], 0 }
   0x2   :  { %11 = vsyncpa [#allocation4], 0  ;;  %s307_s15 = smov [#allocation5]   ;;  %s308_s17 = smov [#allocation2]  }
   0x3   :  { %s30_s16 = sshll.u32 %s307_s15, 4  ;;  %s17_s18 = sshll.u32 %s308_s17, 4  ;;  %s31_s16 = int_to_ptr.vmem [resolvable:$true] %s30_s16  ;;  %s340_s18 = int_to_ptr.vmem [resolvable:$true] %s17_s18 }
   0x4   :  { %s213_s21 = scalar_lea.hbm %s401_s1, 128 }
   0x5   :  { %p214_p0 = scmp.ne.s32.totalorder %s401_s1, %s213_s21  ;;  %p217_p1 = scmp.lt.u32.totalorder %s213_s21, %s401_s1 }
   0x7   :  { %p219_p2 = pnand %p217_p1, %p214_p0 }
   0x9   :  { %222 = shalt.err (!%p219_p2)
}
   0xa   :  { %s223_s26 = scalar_lea.vmem %s31_s16, 128  ;;  %p228_p4 = scmp.lt.s32.totalorder %s31_s16, %s31_s16 }
   0xb   :  { %p224_p3 = scmp.ne.s32.totalorder %s31_s16, %s223_s26  ;;  %p229_p5 = scmp.lt.s32.totalorder %s223_s26, %s223_s26 }
   0xd   :  { %p230_p6 = por %p229_p5, %p228_p4 }
   0xf   :  { %p231_p7 = pnand %p230_p6, %p224_p3 }
  0x11   :  { %234 = shalt.err (!%p231_p7)
}
  0x12   :  { %33 = dma.hbm_to_vmem [thread:$0]  %s401_s1, 128, %s31_s16, [#allocation6]  }
  0x13   :  { %s235_s5 = scalar_lea.hbm %s400_s0, 640 }
  0x14   :  { %p236_p8 = scmp.ne.s32.totalorder %s400_s0, %s235_s5  ;;  %p239_p9 = scmp.lt.u32.totalorder %s235_s5, %s400_s0 }
  0x16   :  { %p241_p10 = pnand %p239_p9, %p236_p8 }
  0x18   :  { %244 = shalt.err (!%p241_p10)
}
  0x19   :  { %s245_s10 = scalar_lea.vmem %s340_s18, 640  ;;  %p250_p12 = scmp.lt.s32.totalorder %s340_s18, %s340_s18 }
  0x1a   :  { %p246_p11 = scmp.ne.s32.totalorder %s340_s18, %s245_s10  ;;  %p251_p13 = scmp.lt.s32.totalorder %s245_s10, %s245_s10 }
  0x1c   :  { %p252_p0 = por %p251_p13, %p250_p12 }
  0x1e   :  { %p253_p1 = pnand %p252_p0, %p246_p11 }
  0x20   :  { %256 = shalt.err (!%p253_p1)
}
  0x21   :  { %s309_s1 = smov 128   ;;  %s310_s11 = smov 8  }
  0x22   :  { %23 = dma.hbm_to_vmem [thread:$0]  %s400_s0, 640, %s340_s18, [#allocation3], %s309_s1, %s309_s1, %s310_s11  }
  0x23   :  { %s311_s14 = smov [#allocation7]   ;;  %s257_s19 = scalar_lea.hbm %s402_s2, 128 }
  0x24   :  { %s40_s15 = sshll.u32 %s311_s14, 4  ;;  %p258_p2 = scmp.ne.s32.totalorder %s402_s2, %s257_s19  ;;  %s41_s15 = int_to_ptr.vmem [resolvable:$true] %s40_s15 }
  0x25   :  { %p261_p3 = scmp.lt.u32.totalorder %s257_s19, %s402_s2 }
  0x27   :  { %p263_p4 = pnand %p261_p3, %p258_p2 }
  0x29   :  { %266 = shalt.err (!%p263_p4)
}
  0x2a   :  { %s267_s24 = scalar_lea.vmem %s41_s15, 128  ;;  %p272_p6 = scmp.lt.s32.totalorder %s41_s15, %s41_s15 }
  0x2b   :  { %p268_p5 = scmp.ne.s32.totalorder %s41_s15, %s267_s24  ;;  %p273_p7 = scmp.lt.s32.totalorder %s267_s24, %s267_s24 }
  0x2d   :  { %p274_p8 = por %p273_p7, %p272_p6 }
  0x2f   :  { %p275_p9 = pnand %p274_p8, %p268_p5 }
  0x31   :  { %278 = shalt.err (!%p275_p9)
}
  0x32   :  { %43 = dma.hbm_to_vmem [thread:$0]  %s402_s2, 128, %s41_s15, [#allocation6]  }
  0x33   :  { %301 = dma.done.wait [#allocation3], 640  }
  0x34   :  { %302 = vsyncadd [#allocation3], 4294966656 }
  0x35   :  { %303 = dma.done.wait [#allocation6], 256  }
  0x36   :  { %304 = vsyncadd [#allocation6], 4294967040  ;;  %v312_v0 = vmov 0.0   ;;  %vm313_vm0 = vmmov 0   ;;  %vm95_vm1 = vcmask 261120   ;;  %v87_v1 = vld [vmem:[#allocation7] sm:$0xff] }
  0x37   :  { %200 = vmatprep.subr.mxu0 %v312_v0  ;;  %202 = vmatprep.mubr.msk.f32.mxu0 %vm313_vm0, %v312_v0  ;;  %v56_v2 = vld [vmem:[#allocation2] sm:$0xff]  ;;  %v62_v3 = vld [vmem:[#allocation2 + $0x8] sm:$0xff]  ;;  %v68_v4 = vld [vmem:[#allocation2 + $0x10] sm:$0xff]  ;;  %s314_s26 = smov [#allocation8]   ;;  %vm172_vm7 = vcmask 64512  }
  0x38   :  { %201 = vmatpush3.xpose.msk.msra.mxu0 %vm95_vm1, %v87_v1  ;;  %vm57_vm2 = vcmp.ge.s32.totalorder %v56_v2, 8388608  ;;  %v74_v5 = vld [vmem:[#allocation2 + $0x18] sm:$0xff]  ;;  %vm63_vm3 = vcmp.ge.s32.totalorder %v62_v3, 8388608  ;;  %vm69_vm4 = vcmp.ge.s32.totalorder %v68_v4, 8388608  ;;  %v80_v7 = vld [vmem:[#allocation2 + $0x20] sm:$0xff]  ;;  %v55_v16 = vld [vmem:[#allocation5] sm:$0xff] }
  0x39   :  { %v190_v6 = vsel %vm57_vm2, 1.0, %v312_v0  ;;  %vm75_vm5 = vcmp.ge.s32.totalorder %v74_v5, 8388608  ;;  %v191_v8 = vsel %vm63_vm3, 1.0, %v312_v0  ;;  %v192_v9 = vsel %vm69_vm4, 1.0, %v312_v0  ;;  %v195_v19 = vld [vmem:[%s403_s3] ss:$0 sm:$0xff] }
  0x3a   :  { %v66_v10 = vadd.f32 %v191_v8, %v190_v6  ;;  %vm81_vm6 = vcmp.ge.s32.totalorder %v80_v7, 8388608  ;;  %v193_v11 = vsel %vm75_vm5, 1.0, %v312_v0  ;;  %s180_s27 = sshll.u32 %s314_s26, 4  ;;  %s181_s27 = int_to_ptr.vmem [resolvable:$true] %s180_s27 }
  0x3b   :  { %v194_v13 = vsel %vm81_vm6, 1.0, %v312_v0  ;;  %s279_s28 = scalar_lea.vmem %s181_s27, 128  ;;  %p284_p11 = scmp.lt.s32.totalorder %s181_s27, %s181_s27 }
  0x3c   :  { %v72_v12 = vadd.f32 %v192_v9, %v66_v10  ;;  %p280_p10 = scmp.ne.s32.totalorder %s181_s27, %s279_s28  ;;  %p285_p12 = scmp.lt.s32.totalorder %s279_s28, %s279_s28 }
  0x3e   :  { %v78_v14 = vadd.f32 %v193_v11, %v72_v12  ;;  %p286_p13 = por %p285_p12, %p284_p11 }
  0x40   :  { %v84_v15 = vadd.f32 %v194_v13, %v78_v14  ;;  %p287_p0 = pnand %p286_p13, %p280_p10 }
  0x42   :  { %v85_v17 = vmul.f32 0.4, %v84_v15 }
  0x44   :  { %v86_v18 = vmul.f32 %v85_v17, %v55_v16 }
  0x46   :  { %203 = vmatmul.mubr.msk.f32.vlgmr.msra.gmra.mrb[0].mxu0 %vm95_vm1, %v86_v18 }
 0x119   :  { %v168_v20 = vpop.f32.mrb[0].mxu0 }
 0x11a   :  { %v169_v21 = vadd.f32 %v195_v19, %v168_v20  ;;  %v204_v22 = vpop.f32.mrb[1].mxu0 }
 0x11c   :  { %173 = vst.msk [vmem:[#allocation8] sm:$0xff] %vm172_vm7, %v169_v21 }
 0x11d   :  { %290 = shalt.err (!%p287_p0)
}
 0x11e   :  { %s291_s5 = scalar_lea.hbm %s404_s4, 128 }
 0x11f   :  { %p292_p1 = scmp.ne.s32.totalorder %s404_s4, %s291_s5  ;;  %p295_p2 = scmp.lt.u32.totalorder %s291_s5, %s404_s4 }
 0x121   :  { %p297_p3 = pnand %p295_p2, %p292_p1 }
 0x123   :  { %300 = shalt.err (!%p297_p3)
}
 0x124   :  { %183 = dma.vmem_to_hbm [thread:$0]  %s181_s27, 128, %s404_s4, [#allocation4]  }
 0x125   :  { %305 = dma.done.wait [#allocation4], 128  }
 0x126   :  { %306 = vsyncadd [#allocation4], 4294967168 }
 0x127   :  { %187 = vsyncpa [#allocation3], 1 }
 0x128   :  { %188 = vsyncpa [#allocation6], 1 }
 0x129   :  { %189 = vsyncpa [#allocation4], 1 }

</bundles_post_ra>
